<compile_context>
chip_gen: v5e
topology: v5e:2x2
jax: 0.10.0
libtpu: 0.0.40
codegen_flags: <defaults>
</compile_context>

<pallas_src>
import functools

import jax
import jax.numpy as jnp
from jax.experimental import pallas as pl
from jax.experimental.pallas import tpu as pltpu


HEAD_PAD = 128                       # lane-dense head / output width
_Q1_COL, _Q2_COL, _QMIN_COL = 0, 1, 2


def _round_up(n, m):
    return ((n + m - 1) // m) * m


def _use_split(hidden_dim):
    # Split twin streams need 128-lane-aligned halves of the fused activation;
    # below that, the block-diagonal zero padding is essentially free anyway.
    return hidden_dim >= 128


def _mish(x):
    # Mish(x) = x * tanh(softplus(x)).  With e = exp(x):
    #   tanh(softplus(x)) = e(e+2) / (e(e+2) + 2)
    # One EUP exp + one divide.  Clamping the exp argument at 20 keeps exp
    # finite and already saturates the tanh factor to 1.0f (n + 2 == n in f32),
    # so no extra select is needed.
    e = jnp.exp(jnp.minimum(x, 20.0))
    n = e * (e + 2.0)
    return x * n / (n + 2.0)


def critic_kernel(state_ref, action_ref, w_ref, w4_ref, b_ref, out_ref, *, split):
    f32 = jnp.float32
    xs = state_ref[...]                  # (bt, sd_pad) f32
    xa = action_ref[...]                 # (bt, ad_pad) f32
    sd_pad = xs.shape[-1]
    ad_pad = xa.shape[-1]
    h2 = w_ref.shape[-1]                 # 2 * hidden (q1-lanes | q2-lanes)
    hd = h2 // 2
    head = out_ref.shape[-1]             # HEAD_PAD
    wdt = w_ref.dtype                    # matmul operand dtype (f32 or bf16)

    o_a = sd_pad                         # W1 action-rows block offset
    o_2 = sd_pad + ad_pad                # W2 block offset
    bias = b_ref[...]                    # (4, max(2H, HEAD_PAD)) f32

    # ---- Layer 1: split matmul replaces the host-side concat([state, action]).
    h = jnp.dot(xs.astype(wdt), w_ref[0:sd_pad, :], preferred_element_type=f32)
    h = h + jnp.dot(xa.astype(wdt), w_ref[o_a:o_a + ad_pad, :],
                    preferred_element_type=f32)
    h = _mish(h + bias[0:1, :h2])

    if split:
        # ---- Layers 2/3: two lane-aligned (bt,H)@(H,H) streams -> half the
        # MXU MACs of the block-diagonal (bt,2H)@(2H,2H) form.
        o_3 = o_2 + hd
        ha = h[:, :hd]
        hb = h[:, hd:]
        ha = _mish(jnp.dot(ha.astype(wdt), w_ref[o_2:o_2 + hd, 0:hd],
                           preferred_element_type=f32) + bias[1:2, :hd])
        hb = _mish(jnp.dot(hb.astype(wdt), w_ref[o_2:o_2 + hd, hd:h2],
                           preferred_element_type=f32) + bias[1:2, hd:h2])
        ha = _mish(jnp.dot(ha.astype(wdt), w_ref[o_3:o_3 + hd, 0:hd],
                           preferred_element_type=f32) + bias[2:3, :hd])
        hb = _mish(jnp.dot(hb.astype(wdt), w_ref[o_3:o_3 + hd, hd:h2],
                           preferred_element_type=f32) + bias[2:3, hd:h2])
        # ---- Heads (lane-dense 128-wide): col 0 = q1, col 1 = q2.
        q = jnp.dot(ha.astype(wdt), w4_ref[0:hd, :], preferred_element_type=f32)
        q = q + jnp.dot(hb.astype(wdt), w4_ref[hd:h2, :],
                        preferred_element_type=f32)
    else:
        # ---- Small-hidden path: fused block-diagonal twin-net matmuls.
        o_3 = o_2 + h2
        h = _mish(jnp.dot(h.astype(wdt), w_ref[o_2:o_2 + h2, :],
                          preferred_element_type=f32) + bias[1:2, :h2])
        h = _mish(jnp.dot(h.astype(wdt), w_ref[o_3:o_3 + h2, :],
                          preferred_element_type=f32) + bias[2:3, :h2])
        q = jnp.dot(h.astype(wdt), w4_ref[...], preferred_element_type=f32)

    q = q + bias[3:4, 0:head]
    # Fused q_min epilogue: place min(q1, q2) in column 2 with a VPU select.
    qmin = jnp.minimum(q[:, _Q1_COL:_Q1_COL + 1], q[:, _Q2_COL:_Q2_COL + 1])
    col = jax.lax.broadcasted_iota(jnp.int32, q.shape, 1)
    out_ref[...] = jnp.where(col == _QMIN_COL, qmin, q).astype(out_ref.dtype)


def _pad_cols(x, mult=8):
    c = x.shape[-1]
    cp = _round_up(c, mult)
    if cp == c:
        return x
    return jnp.pad(x, ((0, 0), (0, cp - c)))


def _select_tile(b, batch_tile):
    if b > batch_tile:
        tile = batch_tile
    elif b >= 512:
        tile = pl.cdiv(b, 2)      # >= 2 grid steps -> v7x 2-TC "parallel" split
    else:
        tile = b
    return _round_up(max(tile, 8), 8)


def _critic_call(state, action, packed_params, *, batch_tile=1024):
    """Runs the fused kernel; returns a lane-dense (b, 128) slab:
       col 0 = q1, col 1 = q2, col 2 = min(q1, q2)."""
    w_slab, w4, b_slab = packed_params
    b = state.shape[0]
    state = _pad_cols(state.astype(jnp.float32))
    action = _pad_cols(action.astype(jnp.float32))
    sd_pad = state.shape[-1]
    ad_pad = action.shape[-1]
    h2 = w_slab.shape[-1]
    hd = h2 // 2
    split = _use_split(hd)

    tile = _select_tile(b, batch_tile)
    grid = (pl.cdiv(b, tile),)

    # Advisory cost estimate (helps XLA overlap this small custom call).
    macs = (b * (sd_pad + ad_pad) * h2                          # layer 1
            + (2 * b * hd * h2 if split else 2 * b * h2 * h2)   # layers 2/3
            + b * h2 * HEAD_PAD)                                # heads
    wbytes = int(w_slab.size * w_slab.dtype.itemsize
                 + w4.size * w4.dtype.itemsize
                 + b_slab.size * b_slab.dtype.itemsize)
    cost = pl.CostEstimate(
        flops=2 * macs,
        transcendentals=3 * b * h2,
        bytes_accessed=int(state.size * 4 + action.size * 4
                           + b * HEAD_PAD * 4 + wbytes))

    # VMEM budget: double-buffered IO tiles + resident weight slabs + a
    # generous activation working set, clamped to stay inside v7x's 64 MiB/TC.
    need = (2 * wbytes
            + 2 * tile * (sd_pad + ad_pad + HEAD_PAD) * 4
            + 8 * tile * max(h2, HEAD_PAD) * 4
            + (8 << 20))
    vmem_limit = int(min(max(need, 32 << 20), 48 << 20))

    kernel = functools.partial(critic_kernel, split=split)
    return pl.pallas_call(
        kernel,
        out_shape=jax.ShapeDtypeStruct((b, HEAD_PAD), jnp.float32),
        grid=grid,
        in_specs=[
            pl.BlockSpec((tile, sd_pad), lambda i: (i, 0)),
            pl.BlockSpec((tile, ad_pad), lambda i: (i, 0)),
            pl.BlockSpec(w_slab.shape, lambda i: (0, 0)),   # weights stay resident
            pl.BlockSpec(w4.shape, lambda i: (0, 0)),
            pl.BlockSpec(b_slab.shape, lambda i: (0, 0)),
        ],
        out_specs=pl.BlockSpec((tile, HEAD_PAD), lambda i: (i, 0)),
        compiler_params=pltpu.CompilerParams(
            dimension_semantics=("parallel",),
            vmem_limit_bytes=vmem_limit),
        cost_estimate=cost,
    )(state, action, w_slab, w4, b_slab)


def critic_forward(state, action, packed_params, *, batch_tile=1024):
    q = _critic_call(state, action, packed_params, batch_tile=batch_tile)
    return q[:, _Q1_COL:_Q1_COL + 1], q[:, _Q2_COL:_Q2_COL + 1]


def critic_q1(state, action, packed_params, *, batch_tile=1024):
    q = _critic_call(state, action, packed_params, batch_tile=batch_tile)
    return q[:, _Q1_COL:_Q1_COL + 1]


def critic_q_min(state, action, packed_params, *, batch_tile=1024):
    q = _critic_call(state, action, packed_params, batch_tile=batch_tile)
    return q[:, _QMIN_COL:_QMIN_COL + 1]


def pack_critic_params(params, state_dim, action_dim, hidden_dim, *,
                       dtype=jnp.float32):
    """Pack the 16 raw Linear params into 3 contiguous, kernel-friendly slabs.

    `dtype` is the matmul-operand dtype of the weight slabs (f32 or bf16).
    bf16 is MXU-native on v6e/v7x and halves the resident weight VMEM (the
    main lever for large hidden_dim on v7x's 64 MiB VMEM); biases stay f32.
    """
    (w1a, b1a, w2a, b2a, w3a, b3a, w4a, b4a,
     w1b, b1b, w2b, b2b, w3b, b3b, w4b, b4b) = params
    h = hidden_dim
    h2 = 2 * h
    sd_pad = _round_up(state_dim, 8)
    ad_pad = _round_up(action_dim, 8)

    # W1: twin nets concatenated along the output dim, split into 8-aligned
    # state/action row blocks (so the kernel never needs a host-side concat).
    w1 = jnp.concatenate([w1a, w1b], axis=1)                       # (in_dim, 2H)
    w1_s = jnp.zeros((sd_pad, h2), jnp.float32).at[:state_dim].set(w1[:state_dim])
    w1_a = jnp.zeros((ad_pad, h2), jnp.float32).at[:action_dim].set(w1[state_dim:])

    if _use_split(h):
        # Side-by-side packing: lanes [:H] feed the q1 stream, lanes [H:] q2.
        w2 = jnp.concatenate([w2a, w2b], axis=1)                   # (H, 2H)
        w3 = jnp.concatenate([w3a, w3b], axis=1)                   # (H, 2H)
    else:
        zz = jnp.zeros((h, h), jnp.float32)
        w2 = jnp.block([[w2a, zz], [zz, w2b]])                     # block-diag (2H, 2H)
        w3 = jnp.block([[w3a, zz], [zz, w3b]])
    w_slab = jnp.concatenate([w1_s, w1_a, w2, w3], axis=0)

    # Heads padded to a lane-dense 128-wide block: col 0 <- q1, col 1 <- q2.
    w4 = jnp.zeros((h2, HEAD_PAD), jnp.float32)
    w4 = w4.at[:h, _Q1_COL:_Q1_COL + 1].set(w4a).at[h:, _Q2_COL:_Q2_COL + 1].set(w4b)

    bw = max(h2, HEAD_PAD)
    b_slab = jnp.zeros((4, bw), jnp.float32)
    b_slab = b_slab.at[0, :h2].set(jnp.concatenate([b1a, b1b], axis=1)[0])
    b_slab = b_slab.at[1, :h2].set(jnp.concatenate([b2a, b2b], axis=1)[0])
    b_slab = b_slab.at[2, :h2].set(jnp.concatenate([b3a, b3b], axis=1)[0])
    b_slab = b_slab.at[3, _Q1_COL].set(b4a[0, 0]).at[3, _Q2_COL].set(b4b[0, 0])

    return w_slab.astype(dtype), w4.astype(dtype), b_slab          # biases stay f32


def init_critic_params(key, state_dim, action_dim, hidden_dim):
    """Deterministic PyTorch-style Linear init: U(-1/sqrt(fan_in), 1/sqrt(fan_in))."""
    in_dim = state_dim + action_dim
    layer_dims = [(in_dim, hidden_dim), (hidden_dim, hidden_dim),
                  (hidden_dim, hidden_dim), (hidden_dim, 1)]
    params = []
    for _ in range(2):  # q1_model, q2_model
        for fan_in, fan_out in layer_dims:
            key, kw, kb = jax.random.split(key, 3)
            bound = 1.0 / jnp.sqrt(jnp.float32(fan_in))
            w = jax.random.uniform(kw, (fan_in, fan_out), jnp.float32,
                                   minval=-bound, maxval=bound)
            bias = jax.random.uniform(kb, (1, fan_out), jnp.float32,
                                      minval=-bound, maxval=bound)
            params += [w, bias]
    return tuple(params)


def critic_forward_ref(state, action, params,
                       precision=jax.lax.Precision.HIGHEST):
    """Pure-JAX reference (mirrors the PyTorch module) for correctness checking."""
    x = jnp.concatenate([state, action], axis=-1)

    def mlp(x, p):
        w1, b1, w2, b2, w3, b3, w4, b4 = p
        h = x
        for w, bb in ((w1, b1), (w2, b2), (w3, b3)):
            z = jnp.dot(h, w, precision=precision) + bb
            h = z * jnp.tanh(jax.nn.softplus(z))
        return jnp.dot(h, w4, precision=precision) + b4

    return mlp(x, params[:8]), mlp(x, params[8:])


def _tol(ref_hi, ref_lo, floor=2e-4):
    """Tolerance tracking the ambient f32-matmul precision of this backend
    (XLA's default f32 dot may use fast bf16 passes on TPU)."""
    gap = max(float(jnp.max(jnp.abs(a - b))) for a, b in zip(ref_hi, ref_lo))
    return max(floor, 4.0 * gap)


if __name__ == "__main__":
    # ---- Small shapes (exercise the block-diagonal small-hidden path). ----
    batch, state_dim, action_dim, hidden_dim = 8, 12, 4, 32
    key = jax.random.PRNGKey(0)
    kp, ks, ka = jax.random.split(key, 3)
    params = init_critic_params(kp, state_dim, action_dim, hidden_dim)
    packed = pack_critic_params(params, state_dim, action_dim, hidden_dim)
    state = jax.random.normal(ks, (batch, state_dim), jnp.float32)
    action = jax.random.normal(ka, (batch, action_dim), jnp.float32)

    q1, q2 = critic_forward(state, action, packed)
    qmin = critic_q_min(state, action, packed)
    jax.block_until_ready((q1, q2, qmin))
    assert q1.shape == (batch, 1) and q2.shape == (batch, 1) and qmin.shape == (batch, 1)

    hi = critic_forward_ref(state, action, params)
    lo = critic_forward_ref(state, action, params,
                            precision=jax.lax.Precision.DEFAULT)
    tol = _tol(hi, lo)
    assert jnp.allclose(q1, hi[0], atol=tol, rtol=tol), "q1 mismatch (small)"
    assert jnp.allclose(q2, hi[1], atol=tol, rtol=tol), "q2 mismatch (small)"
    assert jnp.allclose(qmin, jnp.minimum(hi[0], hi[1]), atol=tol, rtol=tol)

    # ---- Default hidden_dim=256: split twin-stream packing + cdiv batch grid
    # with a padded tail (1000 is not a multiple of the 504-row tile). ----
    hidden_dim = 256
    big = 1000
    params_b = init_critic_params(jax.random.PRNGKey(7), state_dim, action_dim,
                                  hidden_dim)
    packed_b = pack_critic_params(params_b, state_dim, action_dim, hidden_dim)
    ksb, kab = jax.random.split(jax.random.PRNGKey(1))
    state_b = jax.random.normal(ksb, (big, state_dim), jnp.float32)
    action_b = jax.random.normal(kab, (big, action_dim), jnp.float32)

    q1b, q2b = critic_forward(state_b, action_b, packed_b, batch_tile=1024)
    jax.block_until_ready((q1b, q2b))
    hi_b = critic_forward_ref(state_b, action_b, params_b)
    lo_b = critic_forward_ref(state_b, action_b, params_b,
                              precision=jax.lax.Precision.DEFAULT)
    tol_b = _tol(hi_b, lo_b)
    assert jnp.allclose(q1b, hi_b[0], atol=tol_b, rtol=tol_b), "q1 mismatch (big)"
    assert jnp.allclose(q2b, hi_b[1], atol=tol_b, rtol=tol_b), "q2 mismatch (big)"

    # ---- bf16 weight slabs (v6e/v7x MXU-native; halves resident VMEM). ----
    packed_bf16 = pack_critic_params(params_b, state_dim, action_dim, hidden_dim,
                                     dtype=jnp.bfloat16)
    q1c, q2c = critic_forward(state_b, action_b, packed_bf16)
    jax.block_until_ready((q1c, q2c))
    assert jnp.allclose(q1c, hi_b[0], atol=5e-2, rtol=5e-2), "q1 mismatch (bf16)"
    assert jnp.allclose(q2c, hi_b[1], atol=5e-2, rtol=5e-2), "q2 mismatch (bf16)"

    print("KERNEL_OK")
</pallas_src>

<mosaic_0001>
module attributes {stable_mosaic.version = 11 : i64} {
  func.func @critic_kernel(%arg0: i32, %arg1: memref<8x16xf32, #tpu.memory_space<vmem>>, %arg2: memref<8x8xf32, #tpu.memory_space<vmem>>, %arg3: memref<152x64xf32, #tpu.memory_space<vmem>>, %arg4: memref<64x128xf32, #tpu.memory_space<vmem>>, %arg5: memref<4x128xf32, #tpu.memory_space<vmem>>, %arg6: memref<8x128xf32, #tpu.memory_space<vmem>>) attributes {dimension_semantics = [#tpu.dimension_semantics<parallel>], iteration_bounds = array<i64: 1>, scalar_prefetch = 0 : i64, scratch_operands = 0 : i64, tpu.core_type = #tpu.core_type<tc>, window_params = [{transform_indices = @transform_0, window_bounds = array<i64: 8, 16>}, {transform_indices = @transform_1, window_bounds = array<i64: 8, 8>}, {pipeline_mode = #tpu.pipeline_mode<synchronous>, transform_indices = @transform_2, window_bounds = array<i64: 152, 64>}, {pipeline_mode = #tpu.pipeline_mode<synchronous>, transform_indices = @transform_3, window_bounds = array<i64: 64, 128>}, {pipeline_mode = #tpu.pipeline_mode<synchronous>, transform_indices = @transform_4, window_bounds = array<i64: 4, 128>}, {transform_indices = @transform_5, window_bounds = array<i64: 8, 128>}]} {
    %c0 = arith.constant 0 : index
    %c0_0 = arith.constant 0 : index
    %0 = vector.load %arg1[%c0, %c0_0] : memref<8x16xf32, #tpu.memory_space<vmem>>, vector<8x16xf32>
    %c0_1 = arith.constant 0 : index
    %c0_2 = arith.constant 0 : index
    %1 = vector.load %arg2[%c0_1, %c0_2] : memref<8x8xf32, #tpu.memory_space<vmem>>, vector<8x8xf32>
    %c0_3 = arith.constant 0 : index
    %c0_4 = arith.constant 0 : index
    %2 = vector.load %arg5[%c0_3, %c0_4] : memref<4x128xf32, #tpu.memory_space<vmem>>, vector<4x128xf32>
    %c0_5 = arith.constant 0 : index
    %c0_6 = arith.constant 0 : index
    %3 = vector.load %arg3[%c0_5, %c0_6] : memref<152x64xf32, #tpu.memory_space<vmem>>, vector<16x64xf32>
    %cst = arith.constant dense<0.000000e+00> : vector<8x64xf32>
    %4 = tpu.matmul %0, %3, %cst {dimension_numbers = #tpu.dot_dimension_numbers<[1], [0], [0], [1], [0, 0, 1, 1], [], []>} : vector<8x16xf32>, vector<16x64xf32>, vector<8x64xf32> -> vector<8x64xf32>
    %c16 = arith.constant 16 : index
    %c0_7 = arith.constant 0 : index
    %5 = vector.load %arg3[%c16, %c0_7] : memref<152x64xf32, #tpu.memory_space<vmem>>, vector<8x64xf32>
    %cst_8 = arith.constant dense<0.000000e+00> : vector<8x64xf32>
    %6 = tpu.matmul %1, %5, %cst_8 {dimension_numbers = #tpu.dot_dimension_numbers<[1], [0], [0], [1], [0, 0, 1, 1], [], []>} : vector<8x8xf32>, vector<8x64xf32>, vector<8x64xf32> -> vector<8x64xf32>
    %7 = arith.addf %4, %6 : vector<8x64xf32>
    %8 = vector.extract_strided_slice %2 {offsets = [0, 0], sizes = [1, 64], strides = [1, 1]} : vector<4x128xf32> to vector<1x64xf32>
    %9 = vector.broadcast %8 : vector<1x64xf32> to vector<8x64xf32>
    %10 = arith.addf %7, %9 : vector<8x64xf32>
    %cst_9 = arith.constant 2.000000e+01 : f32
    %11 = vector.broadcast %cst_9 : f32 to vector<8x64xf32>
    %12 = arith.minimumf %10, %11 : vector<8x64xf32>
    %13 = math.exp %12 : vector<8x64xf32>
    %cst_10 = arith.constant 2.000000e+00 : f32
    %14 = vector.broadcast %cst_10 : f32 to vector<8x64xf32>
    %15 = arith.addf %13, %14 : vector<8x64xf32>
    %16 = arith.mulf %13, %15 : vector<8x64xf32>
    %17 = arith.mulf %10, %16 : vector<8x64xf32>
    %cst_11 = arith.constant 2.000000e+00 : f32
    %18 = vector.broadcast %cst_11 : f32 to vector<8x64xf32>
    %19 = arith.addf %16, %18 : vector<8x64xf32>
    %20 = arith.divf %17, %19 : vector<8x64xf32>
    %c24 = arith.constant 24 : index
    %c0_12 = arith.constant 0 : index
    %21 = vector.load %arg3[%c24, %c0_12] : memref<152x64xf32, #tpu.memory_space<vmem>>, vector<64x64xf32>
    %cst_13 = arith.constant dense<0.000000e+00> : vector<8x64xf32>
    %22 = tpu.matmul %20, %21, %cst_13 {dimension_numbers = #tpu.dot_dimension_numbers<[1], [0], [0], [1], [0, 0, 1, 1], [], []>} : vector<8x64xf32>, vector<64x64xf32>, vector<8x64xf32> -> vector<8x64xf32>
    %23 = vector.extract_strided_slice %2 {offsets = [1, 0], sizes = [1, 64], strides = [1, 1]} : vector<4x128xf32> to vector<1x64xf32>
    %24 = vector.broadcast %23 : vector<1x64xf32> to vector<8x64xf32>
    %25 = arith.addf %22, %24 : vector<8x64xf32>
    %cst_14 = arith.constant 2.000000e+01 : f32
    %26 = vector.broadcast %cst_14 : f32 to vector<8x64xf32>
    %27 = arith.minimumf %25, %26 : vector<8x64xf32>
    %28 = math.exp %27 : vector<8x64xf32>
    %cst_15 = arith.constant 2.000000e+00 : f32
    %29 = vector.broadcast %cst_15 : f32 to vector<8x64xf32>
    %30 = arith.addf %28, %29 : vector<8x64xf32>
    %31 = arith.mulf %28, %30 : vector<8x64xf32>
    %32 = arith.mulf %25, %31 : vector<8x64xf32>
    %cst_16 = arith.constant 2.000000e+00 : f32
    %33 = vector.broadcast %cst_16 : f32 to vector<8x64xf32>
    %34 = arith.addf %31, %33 : vector<8x64xf32>
    %35 = arith.divf %32, %34 : vector<8x64xf32>
    %c88 = arith.constant 88 : index
    %c0_17 = arith.constant 0 : index
    %36 = vector.load %arg3[%c88, %c0_17] : memref<152x64xf32, #tpu.memory_space<vmem>>, vector<64x64xf32>
    %cst_18 = arith.constant dense<0.000000e+00> : vector<8x64xf32>
    %37 = tpu.matmul %35, %36, %cst_18 {dimension_numbers = #tpu.dot_dimension_numbers<[1], [0], [0], [1], [0, 0, 1, 1], [], []>} : vector<8x64xf32>, vector<64x64xf32>, vector<8x64xf32> -> vector<8x64xf32>
    %38 = vector.extract_strided_slice %2 {offsets = [2, 0], sizes = [1, 64], strides = [1, 1]} : vector<4x128xf32> to vector<1x64xf32>
    %39 = vector.broadcast %38 : vector<1x64xf32> to vector<8x64xf32>
    %40 = arith.addf %37, %39 : vector<8x64xf32>
    %cst_19 = arith.constant 2.000000e+01 : f32
    %41 = vector.broadcast %cst_19 : f32 to vector<8x64xf32>
    %42 = arith.minimumf %40, %41 : vector<8x64xf32>
    %43 = math.exp %42 : vector<8x64xf32>
    %cst_20 = arith.constant 2.000000e+00 : f32
    %44 = vector.broadcast %cst_20 : f32 to vector<8x64xf32>
    %45 = arith.addf %43, %44 : vector<8x64xf32>
    %46 = arith.mulf %43, %45 : vector<8x64xf32>
    %47 = arith.mulf %40, %46 : vector<8x64xf32>
    %cst_21 = arith.constant 2.000000e+00 : f32
    %48 = vector.broadcast %cst_21 : f32 to vector<8x64xf32>
    %49 = arith.addf %46, %48 : vector<8x64xf32>
    %50 = arith.divf %47, %49 : vector<8x64xf32>
    %c0_22 = arith.constant 0 : index
    %c0_23 = arith.constant 0 : index
    %51 = vector.load %arg4[%c0_22, %c0_23] : memref<64x128xf32, #tpu.memory_space<vmem>>, vector<64x128xf32>
    %cst_24 = arith.constant dense<0.000000e+00> : vector<8x128xf32>
    %52 = tpu.matmul %50, %51, %cst_24 {dimension_numbers = #tpu.dot_dimension_numbers<[1], [0], [0], [1], [0, 0, 1, 1], [], []>} : vector<8x64xf32>, vector<64x128xf32>, vector<8x128xf32> -> vector<8x128xf32>
    %53 = vector.extract_strided_slice %2 {offsets = [3, 0], sizes = [1, 128], strides = [1, 1]} : vector<4x128xf32> to vector<1x128xf32>
    %54 = vector.broadcast %53 : vector<1x128xf32> to vector<8x128xf32>
    %55 = arith.addf %52, %54 : vector<8x128xf32>
    %56 = vector.extract_strided_slice %55 {offsets = [0, 0], sizes = [8, 1], strides = [1, 1]} : vector<8x128xf32> to vector<8x1xf32>
    %57 = vector.extract_strided_slice %55 {offsets = [0, 1], sizes = [8, 1], strides = [1, 1]} : vector<8x128xf32> to vector<8x1xf32>
    %58 = arith.minimumf %56, %57 : vector<8x1xf32>
    %59 = tpu.iota {dimensions = array<i32: 1>} : vector<8x128xi32>
    %c2_i32 = arith.constant 2 : i32
    %60 = vector.broadcast %c2_i32 : i32 to vector<8x128xi32>
    %61 = arith.cmpi eq, %59, %60 : vector<8x128xi32>
    %62 = vector.shape_cast %58 : vector<8x1xf32> to vector<8x1xf32>
    %63 = vector.broadcast %62 : vector<8x1xf32> to vector<8x128xf32>
    %64 = arith.select %61, %63, %55 : vector<8x128xi1>, vector<8x128xf32>
    %c0_25 = arith.constant 0 : index
    %c0_26 = arith.constant 0 : index
    %65 = vector.load %arg6[%c0_25, %c0_26] : memref<8x128xf32, #tpu.memory_space<vmem>>, vector<8x128xf32>
    tpu.vector_store %arg6[%c0_25, %c0_26], %64 {strides = array<i32>} : memref<8x128xf32, #tpu.memory_space<vmem>>, vector<8x128xf32>,
    return
  }
  func.func @transform_0(%arg0: i32) -> (i32, i32) {
    %c0_i32 = arith.constant 0 : i32
    %c0_i32_0 = arith.constant 0 : i32
    return %arg0, %c0_i32 : i32, i32
  }
  func.func @transform_1(%arg0: i32) -> (i32, i32) {
    %c0_i32 = arith.constant 0 : i32
    %c0_i32_0 = arith.constant 0 : i32
    return %arg0, %c0_i32 : i32, i32
  }
  func.func @transform_2(%arg0: i32) -> (i32, i32) {
    %c0_i32 = arith.constant 0 : i32
    %c0_i32_0 = arith.constant 0 : i32
    %c0_i32_1 = arith.constant 0 : i32
    return %c0_i32, %c0_i32_0 : i32, i32
  }
  func.func @transform_3(%arg0: i32) -> (i32, i32) {
    %c0_i32 = arith.constant 0 : i32
    %c0_i32_0 = arith.constant 0 : i32
    %c0_i32_1 = arith.constant 0 : i32
    return %c0_i32, %c0_i32_0 : i32, i32
  }
  func.func @transform_4(%arg0: i32) -> (i32, i32) {
    %c0_i32 = arith.constant 0 : i32
    %c0_i32_0 = arith.constant 0 : i32
    %c0_i32_1 = arith.constant 0 : i32
    return %c0_i32, %c0_i32_0 : i32, i32
  }
  func.func @transform_5(%arg0: i32) -> (i32, i32) {
    %c0_i32 = arith.constant 0 : i32
    %c0_i32_0 = arith.constant 0 : i32
    return %arg0, %c0_i32 : i32, i32
  }
}

</mosaic_0001>

<bundles_post_ra>
// kernel: tpu_custom_call.1
= control target key start
LH: loop header
LB: loop body
LE: loop exit
PB: predicated region body
PF: predicated region fallthrough
CT: control target
= control target key end

     0   :  { %vm27_vm0 = vcmask 64512   ;;  %s453_s0 = inlined_call_operand.vmem [shape: f32[8,16], index: 0, kind: input, shape index: {}]   ;;  %s454_s1 = inlined_call_operand.vmem [shape: f32[8,8], index: 1, kind: input, shape index: {}]   ;;  %s455_s2 = inlined_call_operand.vmem [shape: f32[152,64], index: 2, kind: input, shape index: {}]   ;;  %s456_s3 = inlined_call_operand.vmem [shape: f32[64,128], index: 3, kind: input, shape index: {}]   ;;  %s457_s4 = inlined_call_operand.vmem [shape: f32[4,128], index: 4, kind: input, shape index: {}]   ;;  %s458_s5 = inlined_call_operand.hbm [shape: f32[8,128], index: 5, kind: output, shape index: {}]  }
   0x1   :  { %v26_v0 = vld [vmem:[%s455_s2 + $0x10] sm:$0xff]  ;;  %v22_v1 = vld [vmem:[%s454_s1] sm:$0xff]  ;;  %v25_v2 = vld [vmem:[%s455_s2 + $0x8] sm:$0xff] }
   0x2   :  { %46 = vmatpush.msra.mxu1 %v26_v0 }
   0x3   :  { %10 = vsyncpa [#allocation3], 0  ;;  %271 = vmatmul.msk.f32.vlgmr.msra.gmra.mxu1 %vm27_vm0, %v22_v1  ;;  %v24_v3 = vld [vmem:[%s455_s2] sm:$0xff]  ;;  %vm51_vm1 = vcmask 130048   ;;  %v106_v5 = vld [vmem:[%s455_s2 + $0x50] sm:$0xff]  ;;  %vm108_vm6 = vcmask 523264  }
   0x4   :  { %69 = vmatpush.msrb.mxu1 %v25_v2  ;;  %v21_v4 = vld [vmem:[%s453_s0] sm:$0xff]  ;;  %v105_v6 = vld [vmem:[%s455_s2 + $0x48] sm:$0xff]  ;;  %120 = vmatpush.msra.mxu2 %v106_v5  ;;  %v103_v9 = vld [vmem:[%s455_s2 + $0x38] sm:$0xff]  ;;  %s320_s21 = smov [#allocation2]   ;;  %s262_s25 = sshll.u32 %s458_s5, 4  ;;  %s263_s25 = int_to_ptr.hbm [resolvable:$true] %s262_s25 }
   0x5   :  { %v104_v8 = vld [vmem:[%s455_s2 + $0x40] sm:$0xff]  ;;  %v102_v11 = vld [vmem:[%s455_s2 + $0x30] sm:$0xff]  ;;  %v101_v12 = vld [vmem:[%s455_s2 + $0x28] sm:$0xff]  ;;  %s260_s22 = sshll.u32 %s320_s21, 4  ;;  %s261_s22 = int_to_ptr.vmem [resolvable:$true] %s260_s22 }
   0x6   :  { %70 = vmatpush.msrb.mxu1 %v24_v3  ;;  %121 = vmatpush.msra.mxu2 %v105_v6  ;;  %v381_v10 = vld [vmem:[%s457_s4] sm:$0xf]  ;;  %v99_v17 = vld [vmem:[%s455_s2 + $0x18] sm:$0xff]  ;;  %v161_v37 = vld [vmem:[%s455_s2 + $0x90] sm:$0xff] }
   0x7   :  { %v75_v13 = vperm.slane %v381_v10, 0  ;;  %v100_v15 = vld [vmem:[%s455_s2 + $0x20] sm:$0xff]  ;;  %v160_v38 = vld [vmem:[%s455_s2 + $0x88] sm:$0xff]  ;;  %174 = vmatpush.msra.mxu3 %v161_v37  ;;  %v158_v40 = vld [vmem:[%s455_s2 + $0x78] sm:$0xff]  ;;  %v107_v43 = vperm.slane %v381_v10, 1 }
   0x8   :  { %122 = vmatpush.msra.mxu2 %v104_v8  ;;  %v159_v39 = vld [vmem:[%s455_s2 + $0x80] sm:$0xff]  ;;  %v157_v41 = vld [vmem:[%s455_s2 + $0x70] sm:$0xff]  ;;  %v156_v42 = vld [vmem:[%s455_s2 + $0x68] sm:$0xff]  ;;  %v162_v8 = vperm.slane %v381_v10, 2 }
   0x9   :  { %175 = vmatpush.msra.mxu3 %v160_v38  ;;  %v155_v44 = vld [vmem:[%s455_s2 + $0x60] sm:$0xff]  ;;  %v154_v46 = vld [vmem:[%s455_s2 + $0x58] sm:$0xff]  ;;  %v214_v3 = vld [vmem:[%s456_s3 + $0x30] sm:$0xff]  ;;  %v245_v38 = vlaneseq }
   0xa   :  { %123 = vmatpush.msra.mxu2 %v103_v9  ;;  %v215_v2 = vld [vmem:[%s456_s3 + $0x38] sm:$0xff]  ;;  %v212_v5 = vld [vmem:[%s456_s3 + $0x20] sm:$0xff]  ;;  %v209_v9 = vld [vmem:[%s456_s3 + $0x8] sm:$0xff] }
   0xb   :  { %272 = vmatmul.msk.f32.vlgmr.msrb.gmra.mxu1 %vm51_vm1, %v21_v4  ;;  %176 = vmatpush.msra.mxu3 %v159_v39  ;;  %v213_v4 = vld [vmem:[%s456_s3 + $0x28] sm:$0xff]  ;;  %v211_v6 = vld [vmem:[%s456_s3 + $0x18] sm:$0xff]  ;;  %v246_v39 = vand.u32 127, %v245_v38 }
   0xc   :  { %124 = vmatpush.msra.mxu2 %v102_v11  ;;  %228 = vmatpush.msra.mxu0 %v215_v2 }
   0xd   :  { %177 = vmatpush.msra.mxu3 %v158_v40  ;;  %vm247_vm15 = vcmp.eq.s32.totalorder %v246_v39, 2 }
   0xe   :  { %125 = vmatpush.msra.mxu2 %v101_v12  ;;  %229 = vmatpush.msra.mxu0 %v214_v3  ;;  %v208_v12 = vld [vmem:[%s456_s3] sm:$0xff] }
   0xf   :  { %178 = vmatpush.msra.mxu3 %v157_v41 }
  0x10   :  { %126 = vmatpush.msra.mxu2 %v100_v15  ;;  %230 = vmatpush.msra.mxu0 %v213_v4 }
  0x11   :  { %179 = vmatpush.msra.mxu3 %v156_v42 }
  0x12   :  { %127 = vmatpush.msra.mxu2 %v99_v17  ;;  %231 = vmatpush.msra.mxu0 %v212_v5 }
  0x13   :  { %180 = vmatpush.msra.mxu3 %v155_v44 }
  0x14   :  { %232 = vmatpush.msra.mxu0 %v211_v6 }
  0x15   :  { %181 = vmatpush.msra.mxu3 %v154_v46 }
  0x80   :  { %v48_v7 = vpop.f32.mrf.mxu1 }
  0x88   :  { %v72_v14 = vpop.f32.mrf.mxu1 }
  0x89   :  { %v73_v16 = vadd.f32 %v72_v14, %v48_v7  ;;  %v210_v7 = vld [vmem:[%s456_s3 + $0x10] sm:$0xff]  ;;  %s318_s3 = smov 127  }
  0x8a   :  { %233 = vmatpush.msra.mxu0 %v210_v7 }
  0x8b   :  { %v76_v18 = vadd.f32 %v75_v13, %v73_v16 }
  0x8c   :  { %234 = vmatpush.msra.mxu0 %v209_v9 }
  0x8d   :  { %v77_v19 = vmin.f32 %v76_v18, 20.0 }
  0x8e   :  { %235 = vmatpush.msra.mxu0 %v208_v12 }
  0x8f   :  { %v78_v20 = vmul.f32 1.442695, %v77_v19 }
  0x91   :  { %280 = vpow2.f32 %v78_v20 }
  0x97   :  { %v281_v21 = vpop.eup %280 }
  0x98   :  { %v80_v22 = vadd.f32 2.0, %v281_v21 }
  0x9a   :  { %v81_v23 = vmul.f32 %v281_v21, %v80_v22 }
  0x9c   :  { %v83_v24 = vadd.f32 2.0, %v81_v23  ;;  %v82_v33 = vmul.f32 %v81_v23, %v76_v18 }
  0x9e   :  { %282 = vrcp.f32 %v83_v24  ;;  %v95_v28 = vand.u32 2147483648, %v83_v24  ;;  %v93_v30 = vand.u32 2147483647, %v83_v24  ;;  %vm89_vm3 = vweird.f32 %v83_v24 }
  0xa0   :  { %v96_v32 = vor.u32 1.1754944e-38, %v95_v28  ;;  %vm94_vm5 = vcmp.eq.f32.partialorder %v93_v30, 8.507059e+37 }
  0xa4   :  { %v283_v25 = vpop.eup %282 }
  0xa5   :  { %v85_v26 = vmul.f32 %v283_v25, %v83_v24  ;;  %vm90_vm2 = vweird.f32 %v283_v25 }
  0xa6   :  { %vm91_vm4 = vmor %vm89_vm3, %vm90_vm2 }
  0xa7   :  { %v86_v27 = vsub.f32 1.0, %v85_v26 }
  0xa9   :  { %v87_v29 = vmul.f32 %v283_v25, %v86_v27 }
  0xab   :  { %v88_v31 = vadd.f32 %v283_v25, %v87_v29 }
  0xad   :  { %v92_v34 = vsel %vm91_vm4, %v283_v25, %v88_v31 }
  0xae   :  { %v97_v35 = vsel %vm94_vm5, %v96_v32, %v92_v34  ;;  %v216_v32 = vperm.slane %v381_v10, 3 }
  0xaf   :  { %v98_v36 = vmul.f32 %v97_v35, %v82_v33  ;;  %v319_v35 = vmov 0  }
  0xb0   :  { %279 = vset.pattern.permute.xlu0 %v319_v35 }
  0xb1   :  { %273 = vmatmul.msk.f32.vlgmr.msra.gmra.mxu2 %vm108_vm6, %v98_v36 }
 0x134   :  { %v129_v45 = vpop.f32.mrf.mxu2 }
 0x135   :  { %v130_v47 = vadd.f32 %v129_v45, %v107_v43 }
 0x137   :  { %v132_v48 = vmin.f32 %v130_v47, 20.0 }
 0x139   :  { %v133_v49 = vmul.f32 1.442695, %v132_v48 }
 0x13b   :  { %284 = vpow2.f32 %v133_v49 }
 0x141   :  { %v285_v50 = vpop.eup %284 }
 0x142   :  { %v135_v51 = vadd.f32 2.0, %v285_v50 }
 0x144   :  { %v136_v52 = vmul.f32 %v285_v50, %v135_v51 }
 0x146   :  { %v138_v53 = vadd.f32 2.0, %v136_v52  ;;  %v137_v62 = vmul.f32 %v136_v52, %v130_v47 }
 0x148   :  { %286 = vrcp.f32 %v138_v53  ;;  %v150_v57 = vand.u32 2147483648, %v138_v53  ;;  %v148_v59 = vand.u32 2147483647, %v138_v53  ;;  %vm144_vm8 = vweird.f32 %v138_v53 }
 0x14a   :  { %v151_v61 = vor.u32 1.1754944e-38, %v150_v57  ;;  %vm149_vm10 = vcmp.eq.f32.partialorder %v148_v59, 8.507059e+37 }
 0x14e   :  { %v287_v54 = vpop.eup %286 }
 0x14f   :  { %v140_v55 = vmul.f32 %v287_v54, %v138_v53  ;;  %vm145_vm7 = vweird.f32 %v287_v54 }
 0x150   :  { %vm146_vm9 = vmor %vm144_vm8, %vm145_vm7 }
 0x151   :  { %v141_v56 = vsub.f32 1.0, %v140_v55 }
 0x153   :  { %v142_v58 = vmul.f32 %v287_v54, %v141_v56 }
 0x155   :  { %v143_v60 = vadd.f32 %v287_v54, %v142_v58 }
 0x157   :  { %v147_v63 = vsel %vm146_vm9, %v287_v54, %v143_v60 }
 0x158   :  { %v152_v0 = vsel %vm149_vm10, %v151_v61, %v147_v63 }
 0x159   :  { %v153_v1 = vmul.f32 %v152_v0, %v137_v62 }
 0x15b   :  { %274 = vmatmul.msk.f32.vlgmr.msra.gmra.mxu3 %vm108_vm6, %v153_v1 }
 0x1de   :  { %v183_v11 = vpop.f32.mrf.mxu3 }
 0x1df   :  { %v184_v13 = vadd.f32 %v183_v11, %v162_v8 }
 0x1e1   :  { %v186_v14 = vmin.f32 %v184_v13, 20.0 }
 0x1e3   :  { %v187_v15 = vmul.f32 1.442695, %v186_v14 }
 0x1e5   :  { %288 = vpow2.f32 %v187_v15 }
 0x1eb   :  { %v289_v16 = vpop.eup %288 }
 0x1ec   :  { %v189_v17 = vadd.f32 2.0, %v289_v16 }
 0x1ee   :  { %v190_v18 = vmul.f32 %v289_v16, %v189_v17 }
 0x1f0   :  { %v192_v19 = vadd.f32 2.0, %v190_v18  ;;  %v191_v28 = vmul.f32 %v190_v18, %v184_v13 }
 0x1f2   :  { %290 = vrcp.f32 %v192_v19  ;;  %v204_v23 = vand.u32 2147483648, %v192_v19  ;;  %v202_v25 = vand.u32 2147483647, %v192_v19  ;;  %vm198_vm12 = vweird.f32 %v192_v19 }
 0x1f4   :  { %v205_v27 = vor.u32 1.1754944e-38, %v204_v23  ;;  %vm203_vm14 = vcmp.eq.f32.partialorder %v202_v25, 8.507059e+37 }
 0x1f8   :  { %v291_v20 = vpop.eup %290 }
 0x1f9   :  { %v194_v21 = vmul.f32 %v291_v20, %v192_v19  ;;  %vm199_vm11 = vweird.f32 %v291_v20 }
 0x1fa   :  { %vm200_vm13 = vmor %vm198_vm12, %vm199_vm11 }
 0x1fb   :  { %v195_v22 = vsub.f32 1.0, %v194_v21 }
 0x1fd   :  { %v196_v24 = vmul.f32 %v291_v20, %v195_v22 }
 0x1ff   :  { %v197_v26 = vadd.f32 %v291_v20, %v196_v24 }
 0x201   :  { %v201_v29 = vsel %vm200_vm13, %v291_v20, %v197_v26 }
 0x202   :  { %v206_v30 = vsel %vm203_vm14, %v205_v27, %v201_v29 }
 0x203   :  { %v207_v31 = vmul.f32 %v206_v30, %v191_v28 }
 0x205   :  { %275 = vmatmul.msk.f32.vlgmr.msra.gmra.mxu0 %vm108_vm6, %v207_v31 }
 0x282   :  { %v237_v33 = vpop.f32.mrf.mxu0 }
 0x283   :  { %v238_v34 = vadd.f32 %v237_v33, %v216_v32 }
 0x285   :  { %241 = vrot.lane.b32.xlu0 %v238_v34, %s318_s3 }
 0x2f7   :  { %v242_v36 = vpop.permute.xlu0 %241 }
 0x2f8   :  { %v244_v37 = vmin.f32 %v238_v34, %v242_v36 }
 0x2fa   :  { %250 = vperm.xlu0 %279, %v244_v37  }
 0x36c   :  { %v251_v40 = vpop.permute.xlu0 %250 }
 0x36d   :  { %v253_v10 = vsel %vm247_vm15, %v251_v40, %v238_v34 }
 0x36e   :  { %254 = vst [vmem:[#allocation2] sm:$0xff] %v253_v10 }
 0x36f   :  { %265 = dma.vmem_to_hbm [thread:$0]  %s261_s22, 128, %s263_s25, [#allocation3]  }
 0x370   :  { %316 = dma.done.wait [#allocation3], 128  }
 0x371   :  { %317 = vsyncadd [#allocation3], 4294967168 }
 0x372   :  { %270 = vsyncpa [#allocation3], 1 }

</bundles_post_ra>
